<compile_context>
chip_gen: v6e
topology: v6e:2x2x1
jax: 0.10.0
libtpu: 0.0.40
codegen_flags: <defaults>
</compile_context>

<pallas_src>
import jax
import jax.numpy as jnp
import numpy as np
from jax.experimental import pallas as pl
from jax.experimental.pallas import tpu as pltpu


def _pick_hw_tile(hw_total: int, target: int) -> int:
    """Largest multiple-of-128 divisor of hw_total that is <= target.

    Falls back to the full extent (always legal: block dim == array dim)."""
    target = max(128, int(target))
    if hw_total <= target or hw_total % 128 != 0:
        return hw_total
    start = (min(target, hw_total) // 128) * 128
    for cand in range(start, 0, -128):
        if hw_total % cand == 0:
            return cand
    return hw_total


def _make_pool_conv_kernel(inv_hw: float):
    """Phase 1: global avg-pool (tiled reduction) + 1x1 conv + folded BN + ReLU."""

    def kernel(x_ref, w_ref, shift_ref, z_ref, acc_ref):
        # x_ref:     (1, Cin, hw_tile)   lane-dense spatial tile
        # w_ref:     (Cout, Cin)         conv weight pre-scaled by BN gamma/std
        # shift_ref: (Cout, 1)           folded BN shift (includes conv bias)
        # z_ref:     (1, Cout, 1)        output (resident across the t axis)
        # acc_ref:   (1, Cin) f32        running spatial sum
        t = pl.program_id(1)

        @pl.when(t == 0)
        def _init():
            acc_ref[...] = jnp.zeros_like(acc_ref)

        x = x_ref[...].astype(jnp.float32)          # cast after VMEM load
        acc_ref[...] += jnp.sum(x, axis=-1)         # (1, Cin)  cross-lane reduce

        @pl.when(t == pl.num_programs(1) - 1)
        def _finalize():
            pooled = acc_ref[...] * inv_hw                                  # (1, Cin)
            # 1x1 conv on the pooled vector: VPU multiply + XLU lane reduce.
            z = jnp.sum(pooled * w_ref[...], axis=-1, keepdims=True)        # (Cout, 1)
            z = jnp.maximum(z + shift_ref[...], 0.0)                        # BN + ReLU
            z_ref[...] = z[None].astype(z_ref.dtype)                        # (1, Cout, 1)

    return kernel


def _broadcast_kernel(z_ref, o_ref):
    """Phase 2: bilinear resize of a 1x1 map == lane-broadcast of z over H*W."""
    # z_ref: (1, Cout, 1) already in output dtype; o_ref: (1, Cout, hw_tile)
    # -> full-width unmasked lane-dense stores, no per-tile cast.
    o_ref[...] = jnp.broadcast_to(z_ref[...], o_ref.shape)


def global_pooling_branch(x, conv_w, conv_b, gamma, beta, run_mean, run_var,
                          eps=1e-5):
    """x: (N, Cin, H, W). conv_w: (Cout, Cin, 1, 1). Returns (N, Cout, H, W) in x.dtype."""
    n, cin, h, w = x.shape
    cout = conv_w.shape[0]
    hw = h * w
    out_dtype = x.dtype

    # Fold conv bias + eval-mode BatchNorm into the conv weight and a shift:
    #   y = scale * (x@W^T + b - mean) + beta = x @ (scale*W)^T + (beta + scale*(b - mean))
    inv_std = 1.0 / jnp.sqrt(run_var.astype(jnp.float32) + eps)
    scale = gamma.astype(jnp.float32) * inv_std                                  # (Cout,)
    shift = beta.astype(jnp.float32) + scale * (conv_b.astype(jnp.float32)
                                                - run_mean.astype(jnp.float32))  # (Cout,)
    w_scaled = conv_w.reshape(cout, cin).astype(jnp.float32) * scale[:, None]    # (Cout, Cin)
    shift_col = shift.reshape(cout, 1)                                           # (Cout, 1)

    # Lane-dense layout: flatten (H, W) -> H*W (free metadata reshape, no copy).
    # NOTE: no dtype cast here -- x is DMA'd in its native dtype.
    x_flat = x.reshape(n, cin, hw)

    # Tile sizing: biggest multiple-of-128 spatial tile whose double-buffered
    # footprint stays under ~8 MiB -> fits default scoped VMEM on v5e/v6e/v7x
    # while amortizing the ~0.35 us per-grid-step overhead.
    tile_budget = 8 * 1024 * 1024
    x_bytes = jnp.dtype(x.dtype).itemsize
    o_bytes = jnp.dtype(out_dtype).itemsize
    in_tile = _pick_hw_tile(hw, tile_budget // (2 * cin * x_bytes))
    out_tile = _pick_hw_tile(hw, tile_budget // (2 * cout * o_bytes))

    # ---- Phase 1: pool + conv + BN + ReLU -> z (N, Cout, 1) -------------------
    z = pl.pallas_call(
        _make_pool_conv_kernel(1.0 / float(hw)),
        out_shape=jax.ShapeDtypeStruct((n, cout, 1), out_dtype),
        grid_spec=pltpu.PrefetchScalarGridSpec(
            num_scalar_prefetch=0,
            grid=(n, hw // in_tile),
            in_specs=[
                pl.BlockSpec((1, cin, in_tile), lambda i, t: (i, 0, t)),
                pl.BlockSpec((cout, cin), lambda i, t: (0, 0)),
                pl.BlockSpec((cout, 1), lambda i, t: (0, 0)),
            ],
            out_specs=pl.BlockSpec((1, cout, 1), lambda i, t: (i, 0, 0)),
            scratch_shapes=[pltpu.VMEM((1, cin), jnp.float32)],
        ),
        compiler_params=pltpu.CompilerParams(
            dimension_semantics=("parallel", "arbitrary")),
    )(x_flat, w_scaled, shift_col)

    # ---- Phase 2: broadcast writeback over large lane-dense tiles -------------
    out_flat = pl.pallas_call(
        _broadcast_kernel,
        out_shape=jax.ShapeDtypeStruct((n, cout, hw), out_dtype),
        grid_spec=pltpu.PrefetchScalarGridSpec(
            num_scalar_prefetch=0,
            grid=(n, hw // out_tile),
            in_specs=[pl.BlockSpec((1, cout, 1), lambda i, t: (i, 0, 0))],
            out_specs=pl.BlockSpec((1, cout, out_tile), lambda i, t: (i, 0, t)),
        ),
        compiler_params=pltpu.CompilerParams(
            dimension_semantics=("parallel", "parallel")),
    )(z)

    return out_flat.reshape(n, cout, h, w)


def _reference(x, conv_w, conv_b, gamma, beta, run_mean, run_var, eps=1e-5):
    pooled = jnp.mean(x.astype(jnp.float32), axis=(2, 3))            # (N, Cin)
    z = pooled @ conv_w.reshape(conv_w.shape[0], -1).T + conv_b
    z = gamma * (z - run_mean) / jnp.sqrt(run_var + eps) + beta
    z = jnp.maximum(z, 0.0)
    n, cout = z.shape
    h, w = x.shape[2:]
    return jnp.broadcast_to(z.reshape(n, cout, 1, 1), (n, cout, h, w))


if __name__ == "__main__":
    key = jax.random.PRNGKey(0)
    N, Cin, Cout, H, W = 2, 4, 8, 16, 16

    k0, k1, k2, k3, k4, k5, k6 = jax.random.split(key, 7)
    x = jax.random.normal(k0, (N, Cin, H, W), dtype=jnp.float32)

    # Deterministic synthetic parameters (no checkpoint loading).
    conv_w = 0.1 * jax.random.normal(k1, (Cout, Cin, 1, 1), dtype=jnp.float32)
    conv_b = 0.05 * jax.random.normal(k2, (Cout,), dtype=jnp.float32)
    gamma = 1.0 + 0.1 * jax.random.normal(k3, (Cout,), dtype=jnp.float32)
    beta = 0.1 * jax.random.normal(k4, (Cout,), dtype=jnp.float32)
    run_mean = 0.1 * jax.random.normal(k5, (Cout,), dtype=jnp.float32)
    run_var = jnp.abs(1.0 + 0.1 * jax.random.normal(k6, (Cout,), dtype=jnp.float32))

    out = global_pooling_branch(x, conv_w, conv_b, gamma, beta, run_mean, run_var)
    out = jax.block_until_ready(out)

    ref = _reference(x, conv_w, conv_b, gamma, beta, run_mean, run_var)
    np.testing.assert_allclose(np.asarray(out), np.asarray(ref),
                               rtol=1e-4, atol=1e-5)
    print("KERNEL_OK")
</pallas_src>

<mosaic_0001>
module attributes {stable_mosaic.version = 11 : i64} {
  func.func @kernel(%arg0: i32, %arg1: i32, %arg2: memref<1x4x256xf32, #tpu.memory_space<vmem>>, %arg3: memref<8x4xf32, #tpu.memory_space<vmem>>, %arg4: memref<8x1xf32, #tpu.memory_space<vmem>>, %arg5: memref<1x8x1xf32, #tpu.memory_space<vmem>>, %arg6: memref<1x4xf32, #tpu.memory_space<vmem>>) attributes {dimension_semantics = [#tpu.dimension_semantics<parallel>, #tpu.dimension_semantics<arbitrary>], iteration_bounds = array<i64: 2, 1>, scalar_prefetch = 0 : i64, scratch_operands = 1 : i64, tpu.core_type = #tpu.core_type<tc>, window_params = [{transform_indices = @transform_0, window_bounds = array<i64: 1, 4, 256>}, {pipeline_mode = #tpu.pipeline_mode<synchronous>, transform_indices = @transform_1, window_bounds = array<i64: 8, 4>}, {pipeline_mode = #tpu.pipeline_mode<synchronous>, transform_indices = @transform_2, window_bounds = array<i64: 8, 1>}, {transform_indices = @transform_3, window_bounds = array<i64: 1, 8, 1>}]} {
    %c0_i32 = arith.constant 0 : i32
    %0 = arith.cmpi eq, %arg1, %c0_i32 : i32
    %1 = arith.extui %0 : i1 to i32
    %c0_i32_0 = arith.constant 0 : i32
    %2 = arith.cmpi ne, %1, %c0_i32_0 : i32
    scf.if %2 {
      %cst_9 = arith.constant 0.000000e+00 : f32
      %11 = vector.broadcast %cst_9 : f32 to vector<1x4xf32>
      %c0_10 = arith.constant 0 : index
      %c0_11 = arith.constant 0 : index
      %12 = vector.load %arg6[%c0_10, %c0_11] : memref<1x4xf32, #tpu.memory_space<vmem>>, vector<1x4xf32>
      tpu.vector_store %arg6[%c0_10, %c0_11], %11 {strides = array<i32>} : memref<1x4xf32, #tpu.memory_space<vmem>>, vector<1x4xf32>,
    } else {
    }
    %c0 = arith.constant 0 : index
    %c0_1 = arith.constant 0 : index
    %c0_2 = arith.constant 0 : index
    %3 = vector.load %arg2[%c0, %c0_1, %c0_2] : memref<1x4x256xf32, #tpu.memory_space<vmem>>, vector<1x4x256xf32>
    %c0_3 = arith.constant 0 : index
    %c0_4 = arith.constant 0 : index
    %4 = vector.load %arg6[%c0_3, %c0_4] : memref<1x4xf32, #tpu.memory_space<vmem>>, vector<1x4xf32>
    %cst = arith.constant dense<0.000000e+00> : vector<1x4xf32>
    %5 = vector.multi_reduction <add>, %3, %cst [2] : vector<1x4x256xf32> to vector<1x4xf32>
    %6 = arith.addf %4, %5 : vector<1x4xf32>
    %c0_5 = arith.constant 0 : index
    %c0_6 = arith.constant 0 : index
    %7 = vector.load %arg6[%c0_5, %c0_6] : memref<1x4xf32, #tpu.memory_space<vmem>>, vector<1x4xf32>
    tpu.vector_store %arg6[%c0_5, %c0_6], %6 {strides = array<i32>} : memref<1x4xf32, #tpu.memory_space<vmem>>, vector<1x4xf32>,
    %c0_i32_7 = arith.constant 0 : i32
    %8 = arith.cmpi eq, %arg1, %c0_i32_7 : i32
    %9 = arith.extui %8 : i1 to i32
    %c0_i32_8 = arith.constant 0 : i32
    %10 = arith.cmpi ne, %9, %c0_i32_8 : i32
    scf.if %10 {
      %c0_9 = arith.constant 0 : index
      %c0_10 = arith.constant 0 : index
      %11 = vector.load %arg6[%c0_9, %c0_10] : memref<1x4xf32, #tpu.memory_space<vmem>>, vector<1x4xf32>
      %cst_11 = arith.constant 3.906250e-03 : f32
      %12 = vector.broadcast %cst_11 : f32 to vector<1x4xf32>
      %13 = arith.mulf %11, %12 : vector<1x4xf32>
      %c0_12 = arith.constant 0 : index
      %c0_13 = arith.constant 0 : index
      %14 = vector.load %arg3[%c0_12, %c0_13] : memref<8x4xf32, #tpu.memory_space<vmem>>, vector<8x4xf32>
      %15 = vector.broadcast %13 : vector<1x4xf32> to vector<8x4xf32>
      %16 = arith.mulf %15, %14 : vector<8x4xf32>
      %cst_14 = arith.constant dense<0.000000e+00> : vector<8xf32>
      %17 = vector.multi_reduction <add>, %16, %cst_14 [1] : vector<8x4xf32> to vector<8xf32>
      %18 = vector.shape_cast %17 : vector<8xf32> to vector<8x1xf32>
      %c0_15 = arith.constant 0 : index
      %c0_16 = arith.constant 0 : index
      %19 = vector.load %arg4[%c0_15, %c0_16] : memref<8x1xf32, #tpu.memory_space<vmem>>, vector<8x1xf32>
      %20 = arith.addf %18, %19 : vector<8x1xf32>
      %cst_17 = arith.constant 0.000000e+00 : f32
      %21 = vector.broadcast %cst_17 : f32 to vector<8x1xf32>
      %22 = arith.maximumf %20, %21 : vector<8x1xf32>
      %23 = vector.shape_cast %22 : vector<8x1xf32> to vector<1x8x1xf32>
      %c0_18 = arith.constant 0 : index
      %c0_19 = arith.constant 0 : index
      %c0_20 = arith.constant 0 : index
      %24 = vector.load %arg5[%c0_18, %c0_19, %c0_20] : memref<1x8x1xf32, #tpu.memory_space<vmem>>, vector<1x8x1xf32>
      tpu.vector_store %arg5[%c0_18, %c0_19, %c0_20], %23 {strides = array<i32>} : memref<1x8x1xf32, #tpu.memory_space<vmem>>, vector<1x8x1xf32>,
    } else {
    }
    return
  }
  func.func @transform_0(%arg0: i32, %arg1: i32) -> (i32, i32, i32) {
    %c0_i32 = arith.constant 0 : i32
    %c0_i32_0 = arith.constant 0 : i32
    return %arg0, %c0_i32, %arg1 : i32, i32, i32
  }
  func.func @transform_1(%arg0: i32, %arg1: i32) -> (i32, i32) {
    %c0_i32 = arith.constant 0 : i32
    %c0_i32_0 = arith.constant 0 : i32
    %c0_i32_1 = arith.constant 0 : i32
    return %c0_i32, %c0_i32_0 : i32, i32
  }
  func.func @transform_2(%arg0: i32, %arg1: i32) -> (i32, i32) {
    %c0_i32 = arith.constant 0 : i32
    %c0_i32_0 = arith.constant 0 : i32
    %c0_i32_1 = arith.constant 0 : i32
    return %c0_i32, %c0_i32_0 : i32, i32
  }
  func.func @transform_3(%arg0: i32, %arg1: i32) -> (i32, i32, i32) {
    %c0_i32 = arith.constant 0 : i32
    %c0_i32_0 = arith.constant 0 : i32
    %c0_i32_1 = arith.constant 0 : i32
    return %arg0, %c0_i32, %c0_i32_0 : i32, i32, i32
  }
}

</mosaic_0001>

<bundles_post_ra>
// kernel: tpu_custom_call.1
= control target key start
LH: loop header
LB: loop body
LE: loop exit
PB: predicated region body
PF: predicated region fallthrough
CT: control target
= control target key end

     0   :  { %s458_s12 = smov 0   ;;  %s460_s13 = smov 0   ;;  %s506_s0 = inlined_call_operand.vmem [shape: f32[2,4,256], index: 0, kind: input, shape index: {}]   ;;  %s507_s1 = inlined_call_operand.vmem [shape: f32[8,4], index: 1, kind: input, shape index: {}]   ;;  %s508_s2 = inlined_call_operand.vmem [shape: f32[8,1], index: 2, kind: input, shape index: {}]   ;;  %s509_s3 = inlined_call_operand.vmem [shape: f32[2,8,1], index: 3, kind: output, shape index: {}]  }
   0x1   :  { %s462_s14 = smov 0  }
   0x2 LB: > { %s25_s15 = sadd.s32 1, %s429_s13  ;;  %p375_p0 = scmp.ge.s32.totalorder %s433_s14, 1  ;;  %s433_s14 = sphi %s462_s14, %s13_s14   ;;  %s429_s13 = sphi %s460_s13, %s511_s13   ;;  %s425_s12 = sphi %s458_s12, %s510_s12  }
   0x3   : > { %p27_p1 = scmp.ge.s32.totalorder %s25_s15, 2  ;;  %p156_p2 = scmp.lt.s32.totalorder %s433_s14, 3 }
   0x5   : > { %s513_s15 = smov (%p27_p1, %s25_s15), 0  ;;  %p157_p3 = pnand %p375_p0, %p156_p2 }
   0x6   : > { %p184_p4 = scmp.lt.s32.totalorder (!%p157_p3), %s425_s12, 1 }
   0x7   : > { %160 = sbr.rel (%p157_p3) target bundleno = 459 (0x1cb), region = 32 }
   0xc   : > { %s515_s12 = smov (!%p184_p4, %s425_s12), 1  ;;  %vm208_vm0 = vcmask 1043456   ;;  %v435_v5 = vmov 0   ;;  %v215_v6 = vlaneseq  ;;  %vm201_vm1 = vcmask 24576   ;;  %v287_v38 = vld [vmem:[%s507_s1] sm:$0xff] }
   0xd   : > { %s381_s16 = sshll.u32 %s515_s12, 3  ;;  %409 = vset.pattern.permute.xlu0 %v435_v5  ;;  %v436_v9 = vmov 0.0   ;;  %v437_v11 = vmov 1966171168   ;;  %vm295_vm2 = vcmask 31744   ;;  %v299_v42 = vld [vmem:[%s508_s2] sm:$0xff] }
   0xe   : > { %s191_s19 = scalar_lea.vmem %s506_s0, %s381_s16  ;;  %v216_v7 = vshrl.u32 %v215_v6, 7  ;;  %v259_v8 = vand.u32 127, %v215_v6  ;;  %202 = vst.msk [vmem:[#allocation2] sm:$0x1] %vm201_vm1, %v436_v9  ;;  %v234_v12 = vunpack.c.l.s4 %v437_v11  ;;  %s196_s26 = scalar_lea.vmem %s509_s3, %s381_s16  ;;  %vm302_vm3 = vcmask 7168  }
   0xf   : > { %v203_v0 = vld [vmem:[%s191_s19] sm:$0xff] }
  0x10   : > { %v206_v1 = vcombine.high %v203_v0, %v203_v0  ;;  %v209_v2 = vsel %vm208_vm0, %v203_v0, 0.0  ;;  %v262_v10 = vsub.s32 %v259_v8, %v216_v7  ;;  %v235_v13 = vunpack.c.0.s8 %v234_v12 }
  0x11   : > { %v217_v14 = vsub.s32 0, %v216_v7  ;;  %v221_v15 = vsub.s32 1, %v216_v7  ;;  %v225_v16 = vsub.s32 2, %v216_v7  ;;  %v229_v17 = vsub.s32 3, %v216_v7 }
  0x12   : > { %v210_v3 = vsel %vm208_vm0, %v206_v1, 0.0  ;;  %v238_v19 = vsub.s32 %v235_v13, %v216_v7 }
  0x13   : > { %v211_v4 = vadd.f32 %v210_v3, %v209_v2 }
  0x15   : > { %212 = vadd.xlane.f32.xlu0 %v211_v4  ;;  %v204_v33 = vld [vmem:[#allocation2] sm:$0x1] }
  0x9e   : > { %v213_v18 = vpop.xlane.xlu0 %212 }
  0x9f   : > { %v218_v20 = vrot.slane %v213_v18, %v217_v14  ;;  %v222_v21 = vrot.slane %v213_v18, %v221_v15  ;;  %v226_v22 = vrot.slane %v213_v18, %v225_v16  ;;  %v230_v23 = vrot.slane %v213_v18, %v229_v17 }
  0xa1   : > { %v231_v24 = vcombine.low %v218_v20, %v222_v21  ;;  %v232_v25 = vcombine.low %v226_v22, %v230_v23 }
  0xa3   : > { %v239_v26 = vrot.slane %v231_v24, %v238_v19  ;;  %v246_v27 = vrot.slane %v232_v25, %v238_v19 }
  0xa5   : > { %v247_v28 = vcombine.low %v239_v26, %v246_v27 }
  0xa7   : > { %v254_v29 = vrot.slane %v247_v28, %v238_v19 }
  0xa9   : > { %256 = vperm.xlu0 %409, %v254_v29  }
 0x124   : > { %v257_v30 = vpop.permute.xlu0 %256 }
 0x125   : > { %v263_v31 = vrot.slane %v257_v30, %v262_v10 }
 0x127   : > { %v270_v32 = vrot.slane %v263_v31, %v238_v19 }
 0x129   : > { %v277_v34 = vrot.slane %v270_v32, %v238_v19 }
 0x12b   : > { %v279_v35 = vadd.f32 %v277_v34, %v204_v33 }
 0x12d   : > { %281 = vst.msk [vmem:[#allocation2] sm:$0x1] %vm201_vm1, %v279_v35 }
 0x134   : > { %v285_v36 = vld [vmem:[#allocation2] sm:$0x1] }
 0x135   : > { %v286_v37 = vmul.f32 0.00390625, %v285_v36 }
 0x137   : > { %v292_v39 = vrot.slane %v286_v37, %v217_v14 }
 0x139   : > { %v294_v40 = vmul.f32 %v292_v39, %v287_v38 }
 0x13b   : > { %v296_v41 = vsel %vm295_vm2, %v294_v40, 0.0 }
 0x13c   : > { %297 = vadd.xlane.f32.xlu1 %v296_v41 }
 0x1c5   : > { %v298_v43 = vpop.xlane.xlu1 %297 }
 0x1c6   : > { %v300_v44 = vadd.f32 %v299_v42, %v298_v43 }
 0x1c8   : > { %v301_v45 = vmax.f32 %v300_v44, 0.0 }
 0x1ca   : > { %303 = vst.msk [vmem:[%s196_s26] sm:$0xff] %vm302_vm3, %v301_v45 }
 0x1cb PF: > { %s13_s14 = sadd.s32 1, %s433_s14   ;;  %s510_s12 = smov %s429_s13 }
 0x1cc   : > { %p10_p5 = scmp.ge.s32.totalorder %s13_s14, 4   ;;  %s511_s13 = smov %s513_s15 }
 0x1ce   :  { %12 = sbr.rel (!%p10_p5) target bundleno = 2 (0x2), region = 70 }

</bundles_post_ra>
